<compile_context>
chip_gen: v7x
topology: tpu7x:2x2x1
jax: 0.10.0
libtpu: 0.0.40
codegen_flags: <defaults>
</compile_context>

<pallas_src>
import functools

import jax
import jax.numpy as jnp
from jax.experimental import pallas as pl
from jax.experimental.pallas import tpu as pltpu


# NT dot: contract the last dim of both operands (A [H,K] . x [TB,K] -> [H,TB]).
_NT_DIM_NUMBERS = (((1,), (1,)), ((), ()))


def aprox_net_kernel(x_ref,
                     a1_ref, c1_ref,
                     a2_ref, c2_ref,
                     a3_ref, c3_ref,
                     a4_ref, c4_ref,
                     a5_ref, c5_ref,
                     a6_ref, c6_ref,
                     o_ref):
    # x tile arrives batch-major [TB, 8]; the NT matmul contracts its feature
    # axis directly so no transpose of the tile is ever materialized.  From the
    # first layer on, activations are feature-major [H, TB]: features on
    # sublanes, batch on the 128-wide lane axis (lane-dense tanh / store path).
    h = jax.lax.dot_general(a1_ref[...], x_ref[...], _NT_DIM_NUMBERS,
                            preferred_element_type=jnp.float32) + c1_ref[...]
    h = jnp.tanh(h)                                                     # [H, TB]
    h = jnp.tanh(jnp.dot(a2_ref[...], h,
                         preferred_element_type=jnp.float32) + c2_ref[...])
    h = jnp.tanh(jnp.dot(a3_ref[...], h,
                         preferred_element_type=jnp.float32) + c3_ref[...])
    h = jnp.tanh(jnp.dot(a4_ref[...], h,
                         preferred_element_type=jnp.float32) + c4_ref[...])
    h = jnp.tanh(jnp.dot(a5_ref[...], h,
                         preferred_element_type=jnp.float32) + c5_ref[...])
    h = jnp.dot(a6_ref[...], h,
                preferred_element_type=jnp.float32) + c6_ref[...]            # [1, TB]
    o_ref[...] = jnp.maximum(h, 0.0).astype(o_ref.dtype)                     # ReLU


def _round_up(a, m):
    return ((a + m - 1) // m) * m


def fold_params(params):
    """One-time host-side transform: fold sigmoid's affine constants into the
    weights, using sigmoid(z) = 0.5 * tanh(0.5 * z) + 0.5.

    After folding, hidden layer l computes t_l = tanh(A_l @ t_{l-1} + c_l)
    (with t_0 = x) and the head computes relu(A_6 @ t_5 + c_6) — exactly
    equal to the original Linear/Sigmoid/ReLU stack.
    """
    folded = {}
    # Layer 1: 0.5 * z1 = 0.5*W1 @ x + 0.5*b1
    folded["a1"] = 0.5 * params["w1"]
    folded["c1"] = 0.5 * params["b1"]
    # Layers 2..5: 0.5*z_l = 0.25*W_l @ t_{l-1} + (0.25*W_l@1 + 0.5*b_l)
    for l in range(2, 6):
        w, b = params[f"w{l}"], params[f"b{l}"]
        folded[f"a{l}"] = 0.25 * w
        folded[f"c{l}"] = 0.25 * jnp.sum(w, axis=1, keepdims=True) + 0.5 * b
    # Layer 6 (no sigmoid): z6 = 0.5*W6 @ t_5 + (0.5*W6@1 + b6)
    w, b = params["w6"], params["b6"]
    folded["a6"] = 0.5 * w
    folded["c6"] = 0.5 * jnp.sum(w, axis=1, keepdims=True) + b
    return folded


@functools.partial(jax.jit, static_argnames=("tb",))
def aprox_net_forward(x, folded, *, tb=2048):
    """x: [B, 8] f32.  folded: output of fold_params (aK is [out, in], cK is [out, 1])."""
    B, n_in = x.shape

    # Batch tile on the lane axis: multiple of 128.  Force >= 2 grid steps when
    # the padded batch exceeds one tile so the "parallel" axis can shard across
    # v7x's two TensorCores.  Sweep tb (512..1024 on v5e, 2048..8192 on v6e/v7x).
    tb = max(128, (int(tb) // 128) * 128)
    B128 = _round_up(B, 128)
    if B128 > 128:
        TB = min(tb, _round_up(pl.cdiv(B128, 2), 128))
    else:
        TB = 128
    Bp = _round_up(B, TB)

    x_p = x if Bp == B else jnp.pad(x, ((0, Bp - B), (0, 0)))          # [Bp, 8]

    weight_args = [folded["a1"], folded["c1"],
                   folded["a2"], folded["c2"],
                   folded["a3"], folded["c3"],
                   folded["a4"], folded["c4"],
                   folded["a5"], folded["c5"],
                   folded["a6"], folded["c6"]]

    # x is tiled batch-major along the grid axis (no XLA transpose); the output
    # is [1, Bp] so its per-step block is lane-dense.  Weights/biases use a
    # constant index_map -> DMA'd once, VMEM-resident across grid steps.
    x_spec = pl.BlockSpec((TB, n_in), lambda i: (i, 0))
    o_spec = pl.BlockSpec((1, TB), lambda i: (0, i))
    const_specs = [pl.BlockSpec(w.shape, lambda i: (0, 0)) for w in weight_args]

    oT = pl.pallas_call(
        aprox_net_kernel,
        out_shape=jax.ShapeDtypeStruct((1, Bp), jnp.float32),
        grid=(Bp // TB,),
        in_specs=[x_spec] + const_specs,
        out_specs=o_spec,
        compiler_params=pltpu.CompilerParams(
            dimension_semantics=("parallel",)),
    )(x_p, *weight_args)

    # (1, Bp) -> (Bp, 1) is a degenerate-dim reshape (free), then drop padding.
    return oT.T[:B]


def init_params(key, n_hidden):
    """Deterministic init mimicking torch.nn.Linear (U(-1/sqrt(fan_in), ...)).

    Weights kept in PyTorch's [out, in] layout; biases as [out, 1] columns.
    """
    dims = [(8, n_hidden),
            (n_hidden, n_hidden),
            (n_hidden, n_hidden),
            (n_hidden, n_hidden),
            (n_hidden, n_hidden),
            (n_hidden, 1)]
    params = {}
    for i, (fan_in, fan_out) in enumerate(dims, start=1):
        key, kw, kb = jax.random.split(key, 3)
        bound = 1.0 / jnp.sqrt(fan_in)
        params[f"w{i}"] = jax.random.uniform(
            kw, (fan_out, fan_in), jnp.float32, -bound, bound)
        params[f"b{i}"] = jax.random.uniform(
            kb, (fan_out, 1), jnp.float32, -bound, bound)
    return params


def reference_forward(x, params):
    """Pure-JAX reference of AproxNet.forward (unfolded params)."""
    h = x
    for i in range(1, 6):
        h = jax.nn.sigmoid(h @ params[f"w{i}"].T + params[f"b{i}"].T)
    h = jnp.maximum(h @ params["w6"].T + params["b6"].T, 0.0)
    return h


if __name__ == "__main__":
    key = jax.random.PRNGKey(0)
    n_hidden = 32

    kparam, kx1, kx2 = jax.random.split(key, 3)
    params = init_params(kparam, n_hidden)
    folded = fold_params(params)        # one-time host-side sigmoid folding

    # Small case from the spec (B=8): single 128-wide padded tile.
    x_small = jax.random.normal(kx1, (8, 8), jnp.float32)
    out_small = jax.block_until_ready(aprox_net_forward(x_small, folded))
    ref_small = reference_forward(x_small, params)
    assert out_small.shape == (8, 1), out_small.shape
    assert jnp.allclose(out_small, ref_small, atol=1e-5, rtol=1e-4), (
        "Pallas output mismatch vs reference (B=8)")

    # Non-multiple batch with a real multi-step grid (exercises tiling, padding
    # and the >=2-step / parallel-axis path).
    x_big = jax.random.normal(kx2, (300, 8), jnp.float32)
    out_big = jax.block_until_ready(aprox_net_forward(x_big, folded, tb=128))
    ref_big = reference_forward(x_big, params)
    assert out_big.shape == (300, 1), out_big.shape
    assert jnp.allclose(out_big, ref_big, atol=1e-5, rtol=1e-4), (
        "Pallas output mismatch vs reference (B=300)")

    print("KERNEL_OK")
</pallas_src>

<mosaic_0001>
module attributes {stable_mosaic.version = 11 : i64} {
  func.func @aprox_net_kernel(%arg0: i32, %arg1: memref<128x8xf32, #tpu.memory_space<vmem>>, %arg2: memref<32x8xf32, #tpu.memory_space<vmem>>, %arg3: memref<32x1xf32, #tpu.memory_space<vmem>>, %arg4: memref<32x32xf32, #tpu.memory_space<vmem>>, %arg5: memref<32x1xf32, #tpu.memory_space<vmem>>, %arg6: memref<32x32xf32, #tpu.memory_space<vmem>>, %arg7: memref<32x1xf32, #tpu.memory_space<vmem>>, %arg8: memref<32x32xf32, #tpu.memory_space<vmem>>, %arg9: memref<32x1xf32, #tpu.memory_space<vmem>>, %arg10: memref<32x32xf32, #tpu.memory_space<vmem>>, %arg11: memref<32x1xf32, #tpu.memory_space<vmem>>, %arg12: memref<1x32xf32, #tpu.memory_space<vmem>>, %arg13: memref<1x1xf32, #tpu.memory_space<vmem>>, %arg14: memref<1x128xf32, #tpu.memory_space<vmem>>) attributes {dimension_semantics = [#tpu.dimension_semantics<parallel>], iteration_bounds = array<i64: 1>, scalar_prefetch = 0 : i64, scratch_operands = 0 : i64, tpu.core_type = #tpu.core_type<tc>, window_params = [{transform_indices = @transform_0, window_bounds = array<i64: 128, 8>}, {pipeline_mode = #tpu.pipeline_mode<synchronous>, transform_indices = @transform_1, window_bounds = array<i64: 32, 8>}, {pipeline_mode = #tpu.pipeline_mode<synchronous>, transform_indices = @transform_2, window_bounds = array<i64: 32, 1>}, {pipeline_mode = #tpu.pipeline_mode<synchronous>, transform_indices = @transform_3, window_bounds = array<i64: 32, 32>}, {pipeline_mode = #tpu.pipeline_mode<synchronous>, transform_indices = @transform_4, window_bounds = array<i64: 32, 1>}, {pipeline_mode = #tpu.pipeline_mode<synchronous>, transform_indices = @transform_5, window_bounds = array<i64: 32, 32>}, {pipeline_mode = #tpu.pipeline_mode<synchronous>, transform_indices = @transform_6, window_bounds = array<i64: 32, 1>}, {pipeline_mode = #tpu.pipeline_mode<synchronous>, transform_indices = @transform_7, window_bounds = array<i64: 32, 32>}, {pipeline_mode = #tpu.pipeline_mode<synchronous>, transform_indices = @transform_8, window_bounds = array<i64: 32, 1>}, {pipeline_mode = #tpu.pipeline_mode<synchronous>, transform_indices = @transform_9, window_bounds = array<i64: 32, 32>}, {pipeline_mode = #tpu.pipeline_mode<synchronous>, transform_indices = @transform_10, window_bounds = array<i64: 32, 1>}, {pipeline_mode = #tpu.pipeline_mode<synchronous>, transform_indices = @transform_11, window_bounds = array<i64: 1, 32>}, {pipeline_mode = #tpu.pipeline_mode<synchronous>, transform_indices = @transform_12, window_bounds = array<i64: 1, 1>}, {transform_indices = @transform_13, window_bounds = array<i64: 1, 128>}]} {
    %c0 = arith.constant 0 : index
    %c0_0 = arith.constant 0 : index
    %0 = vector.load %arg2[%c0, %c0_0] : memref<32x8xf32, #tpu.memory_space<vmem>>, vector<32x8xf32>
    %c0_1 = arith.constant 0 : index
    %c0_2 = arith.constant 0 : index
    %1 = vector.load %arg1[%c0_1, %c0_2] : memref<128x8xf32, #tpu.memory_space<vmem>>, vector<128x8xf32>
    %cst = arith.constant dense<0.000000e+00> : vector<32x128xf32>
    %2 = tpu.matmul %0, %1, %cst {dimension_numbers = #tpu.dot_dimension_numbers<[1], [1], [0], [0], [0, 0, 1, 0], [], []>} : vector<32x8xf32>, vector<128x8xf32>, vector<32x128xf32> -> vector<32x128xf32>
    %c0_3 = arith.constant 0 : index
    %c0_4 = arith.constant 0 : index
    %3 = vector.load %arg3[%c0_3, %c0_4] : memref<32x1xf32, #tpu.memory_space<vmem>>, vector<32x1xf32>
    %4 = vector.broadcast %3 : vector<32x1xf32> to vector<32x128xf32>
    %5 = arith.addf %2, %4 : vector<32x128xf32>
    %6 = math.tanh %5 : vector<32x128xf32>
    %c0_5 = arith.constant 0 : index
    %c0_6 = arith.constant 0 : index
    %7 = vector.load %arg4[%c0_5, %c0_6] : memref<32x32xf32, #tpu.memory_space<vmem>>, vector<32x32xf32>
    %cst_7 = arith.constant dense<0.000000e+00> : vector<32x128xf32>
    %8 = tpu.matmul %7, %6, %cst_7 {dimension_numbers = #tpu.dot_dimension_numbers<[1], [0], [0], [1], [0, 0, 1, 1], [], []>} : vector<32x32xf32>, vector<32x128xf32>, vector<32x128xf32> -> vector<32x128xf32>
    %c0_8 = arith.constant 0 : index
    %c0_9 = arith.constant 0 : index
    %9 = vector.load %arg5[%c0_8, %c0_9] : memref<32x1xf32, #tpu.memory_space<vmem>>, vector<32x1xf32>
    %10 = vector.broadcast %9 : vector<32x1xf32> to vector<32x128xf32>
    %11 = arith.addf %8, %10 : vector<32x128xf32>
    %12 = math.tanh %11 : vector<32x128xf32>
    %c0_10 = arith.constant 0 : index
    %c0_11 = arith.constant 0 : index
    %13 = vector.load %arg6[%c0_10, %c0_11] : memref<32x32xf32, #tpu.memory_space<vmem>>, vector<32x32xf32>
    %cst_12 = arith.constant dense<0.000000e+00> : vector<32x128xf32>
    %14 = tpu.matmul %13, %12, %cst_12 {dimension_numbers = #tpu.dot_dimension_numbers<[1], [0], [0], [1], [0, 0, 1, 1], [], []>} : vector<32x32xf32>, vector<32x128xf32>, vector<32x128xf32> -> vector<32x128xf32>
    %c0_13 = arith.constant 0 : index
    %c0_14 = arith.constant 0 : index
    %15 = vector.load %arg7[%c0_13, %c0_14] : memref<32x1xf32, #tpu.memory_space<vmem>>, vector<32x1xf32>
    %16 = vector.broadcast %15 : vector<32x1xf32> to vector<32x128xf32>
    %17 = arith.addf %14, %16 : vector<32x128xf32>
    %18 = math.tanh %17 : vector<32x128xf32>
    %c0_15 = arith.constant 0 : index
    %c0_16 = arith.constant 0 : index
    %19 = vector.load %arg8[%c0_15, %c0_16] : memref<32x32xf32, #tpu.memory_space<vmem>>, vector<32x32xf32>
    %cst_17 = arith.constant dense<0.000000e+00> : vector<32x128xf32>
    %20 = tpu.matmul %19, %18, %cst_17 {dimension_numbers = #tpu.dot_dimension_numbers<[1], [0], [0], [1], [0, 0, 1, 1], [], []>} : vector<32x32xf32>, vector<32x128xf32>, vector<32x128xf32> -> vector<32x128xf32>
    %c0_18 = arith.constant 0 : index
    %c0_19 = arith.constant 0 : index
    %21 = vector.load %arg9[%c0_18, %c0_19] : memref<32x1xf32, #tpu.memory_space<vmem>>, vector<32x1xf32>
    %22 = vector.broadcast %21 : vector<32x1xf32> to vector<32x128xf32>
    %23 = arith.addf %20, %22 : vector<32x128xf32>
    %24 = math.tanh %23 : vector<32x128xf32>
    %c0_20 = arith.constant 0 : index
    %c0_21 = arith.constant 0 : index
    %25 = vector.load %arg10[%c0_20, %c0_21] : memref<32x32xf32, #tpu.memory_space<vmem>>, vector<32x32xf32>
    %cst_22 = arith.constant dense<0.000000e+00> : vector<32x128xf32>
    %26 = tpu.matmul %25, %24, %cst_22 {dimension_numbers = #tpu.dot_dimension_numbers<[1], [0], [0], [1], [0, 0, 1, 1], [], []>} : vector<32x32xf32>, vector<32x128xf32>, vector<32x128xf32> -> vector<32x128xf32>
    %c0_23 = arith.constant 0 : index
    %c0_24 = arith.constant 0 : index
    %27 = vector.load %arg11[%c0_23, %c0_24] : memref<32x1xf32, #tpu.memory_space<vmem>>, vector<32x1xf32>
    %28 = vector.broadcast %27 : vector<32x1xf32> to vector<32x128xf32>
    %29 = arith.addf %26, %28 : vector<32x128xf32>
    %30 = math.tanh %29 : vector<32x128xf32>
    %c0_25 = arith.constant 0 : index
    %c0_26 = arith.constant 0 : index
    %31 = vector.load %arg12[%c0_25, %c0_26] : memref<1x32xf32, #tpu.memory_space<vmem>>, vector<1x32xf32>
    %cst_27 = arith.constant dense<0.000000e+00> : vector<1x128xf32>
    %32 = tpu.matmul %31, %30, %cst_27 {dimension_numbers = #tpu.dot_dimension_numbers<[1], [0], [0], [1], [0, 0, 1, 1], [], []>} : vector<1x32xf32>, vector<32x128xf32>, vector<1x128xf32> -> vector<1x128xf32>
    %c0_28 = arith.constant 0 : index
    %c0_29 = arith.constant 0 : index
    %33 = vector.load %arg13[%c0_28, %c0_29] : memref<1x1xf32, #tpu.memory_space<vmem>>, vector<1x1xf32>
    %34 = vector.broadcast %33 : vector<1x1xf32> to vector<1x128xf32>
    %35 = arith.addf %32, %34 : vector<1x128xf32>
    %cst_30 = arith.constant 0.000000e+00 : f32
    %36 = vector.broadcast %cst_30 : f32 to vector<1x128xf32>
    %37 = arith.maximumf %35, %36 : vector<1x128xf32>
    %c0_31 = arith.constant 0 : index
    %c0_32 = arith.constant 0 : index
    %38 = vector.load %arg14[%c0_31, %c0_32] : memref<1x128xf32, #tpu.memory_space<vmem>>, vector<1x128xf32>
    tpu.vector_store %arg14[%c0_31, %c0_32], %37 {strides = array<i32>} : memref<1x128xf32, #tpu.memory_space<vmem>>, vector<1x128xf32>,
    return
  }
  func.func @transform_0(%arg0: i32) -> (i32, i32) {
    %c0_i32 = arith.constant 0 : i32
    %c0_i32_0 = arith.constant 0 : i32
    return %arg0, %c0_i32 : i32, i32
  }
  func.func @transform_1(%arg0: i32) -> (i32, i32) {
    %c0_i32 = arith.constant 0 : i32
    %c0_i32_0 = arith.constant 0 : i32
    %c0_i32_1 = arith.constant 0 : i32
    return %c0_i32, %c0_i32_0 : i32, i32
  }
  func.func @transform_2(%arg0: i32) -> (i32, i32) {
    %c0_i32 = arith.constant 0 : i32
    %c0_i32_0 = arith.constant 0 : i32
    %c0_i32_1 = arith.constant 0 : i32
    return %c0_i32, %c0_i32_0 : i32, i32
  }
  func.func @transform_3(%arg0: i32) -> (i32, i32) {
    %c0_i32 = arith.constant 0 : i32
    %c0_i32_0 = arith.constant 0 : i32
    %c0_i32_1 = arith.constant 0 : i32
    return %c0_i32, %c0_i32_0 : i32, i32
  }
  func.func @transform_4(%arg0: i32) -> (i32, i32) {
    %c0_i32 = arith.constant 0 : i32
    %c0_i32_0 = arith.constant 0 : i32
    %c0_i32_1 = arith.constant 0 : i32
    return %c0_i32, %c0_i32_0 : i32, i32
  }
  func.func @transform_5(%arg0: i32) -> (i32, i32) {
    %c0_i32 = arith.constant 0 : i32
    %c0_i32_0 = arith.constant 0 : i32
    %c0_i32_1 = arith.constant 0 : i32
    return %c0_i32, %c0_i32_0 : i32, i32
  }
  func.func @transform_6(%arg0: i32) -> (i32, i32) {
    %c0_i32 = arith.constant 0 : i32
    %c0_i32_0 = arith.constant 0 : i32
    %c0_i32_1 = arith.constant 0 : i32
    return %c0_i32, %c0_i32_0 : i32, i32
  }
  func.func @transform_7(%arg0: i32) -> (i32, i32) {
    %c0_i32 = arith.constant 0 : i32
    %c0_i32_0 = arith.constant 0 : i32
    %c0_i32_1 = arith.constant 0 : i32
    return %c0_i32, %c0_i32_0 : i32, i32
  }
  func.func @transform_8(%arg0: i32) -> (i32, i32) {
    %c0_i32 = arith.constant 0 : i32
    %c0_i32_0 = arith.constant 0 : i32
    %c0_i32_1 = arith.constant 0 : i32
    return %c0_i32, %c0_i32_0 : i32, i32
  }
  func.func @transform_9(%arg0: i32) -> (i32, i32) {
    %c0_i32 = arith.constant 0 : i32
    %c0_i32_0 = arith.constant 0 : i32
    %c0_i32_1 = arith.constant 0 : i32
    return %c0_i32, %c0_i32_0 : i32, i32
  }
  func.func @transform_10(%arg0: i32) -> (i32, i32) {
    %c0_i32 = arith.constant 0 : i32
    %c0_i32_0 = arith.constant 0 : i32
    %c0_i32_1 = arith.constant 0 : i32
    return %c0_i32, %c0_i32_0 : i32, i32
  }
  func.func @transform_11(%arg0: i32) -> (i32, i32) {
    %c0_i32 = arith.constant 0 : i32
    %c0_i32_0 = arith.constant 0 : i32
    %c0_i32_1 = arith.constant 0 : i32
    return %c0_i32, %c0_i32_0 : i32, i32
  }
  func.func @transform_12(%arg0: i32) -> (i32, i32) {
    %c0_i32 = arith.constant 0 : i32
    %c0_i32_0 = arith.constant 0 : i32
    %c0_i32_1 = arith.constant 0 : i32
    return %c0_i32, %c0_i32_0 : i32, i32
  }
  func.func @transform_13(%arg0: i32) -> (i32, i32) {
    %c0_i32 = arith.constant 0 : i32
    %c0_i32_0 = arith.constant 0 : i32
    return %c0_i32, %arg0 : i32, i32
  }
}

</mosaic_0001>

<bundles_post_ra>
// kernel: aprox_net_forward.1
= control target key start
LH: loop header
LB: loop body
LE: loop exit
PB: predicated region body
PF: predicated region fallthrough
CT: control target
= control target key end

     0   :  { %vm90_vm0 = vcmask 64512   ;;  %v1178_v3 = vmov 0   ;;  %vm268_vm2 = vcmask 261120   ;;  %vm1180_vm3 = vmmov 0   ;;  %s1488_s0 = inlined_call_operand.vmem [shape: f32[128,8], index: 0, kind: input, shape index: {}]   ;;  %s1489_s12 = inlined_call_operand.<no memory space> [shape: f32[1,1], index: 12, kind: input, shape index: {}]   ;;  %s1490_s1 = inlined_call_operand.vmem [shape: f32[32,8], index: 1, kind: input, shape index: {}]   ;;  %s1491_s2 = inlined_call_operand.vmem [shape: f32[32,1], index: 2, kind: input, shape index: {}]   ;;  %s1492_s4 = inlined_call_operand.vmem [shape: f32[32,1], index: 4, kind: input, shape index: {}]   ;;  %s1493_s6 = inlined_call_operand.vmem [shape: f32[32,1], index: 6, kind: input, shape index: {}]   ;;  %s1494_s8 = inlined_call_operand.vmem [shape: f32[32,1], index: 8, kind: input, shape index: {}]   ;;  %s1495_s10 = inlined_call_operand.vmem [shape: f32[32,1], index: 10, kind: input, shape index: {}]   ;;  %s1496_s3 = inlined_call_operand.vmem [shape: f32[32,32], index: 3, kind: input, shape index: {}]   ;;  %s1497_s5 = inlined_call_operand.vmem [shape: f32[32,32], index: 5, kind: input, shape index: {}]   ;;  %s1498_s7 = inlined_call_operand.vmem [shape: f32[32,32], index: 7, kind: input, shape index: {}]   ;;  %s1499_s9 = inlined_call_operand.vmem [shape: f32[32,32], index: 9, kind: input, shape index: {}]   ;;  %s1500_s11 = inlined_call_operand.vmem [shape: f32[1,32], index: 11, kind: input, shape index: {}]   ;;  %s1501_s13 = inlined_call_operand.vmem [shape: f32[1,128], index: 13, kind: output, shape index: {}]  }
   0x1   :  { %v50_v0 = vld [vmem:[%s1488_s0] sm:$0xff]  ;;  %v51_v1 = vld [vmem:[%s1488_s0 + $0x8] sm:$0xff]  ;;  %vm1260_vm1 = vmpackc.low %vm90_vm0, %vm90_vm0  ;;  %1136 = vset.pattern.permute.xlu0 %v1178_v3  ;;  %1137 = vset.pattern.permute.xlu1 %v1178_v3  ;;  %v18_v4 = vstv %s1489_s12 }
   0x2   :  { %v1046_v5 = vpack.c.bf16 %v51_v1, %v50_v0  ;;  %v52_v6 = vld [vmem:[%s1488_s0 + $0x10] sm:$0xff]  ;;  %v53_v7 = vld [vmem:[%s1488_s0 + $0x18] sm:$0xff]  ;;  %19 = vst [vmem:[#allocation2] sm:$0x1] %v18_v4  ;;  %v46_v9 = vld [vmem:[%s1490_s1] sm:$0xff] }
   0x3   :  { %v1052_v8 = vpack.c.bf16 %v53_v7, %v52_v6  ;;  %v54_v10 = vld [vmem:[%s1488_s0 + $0x20] sm:$0xff]  ;;  %v55_v11 = vld [vmem:[%s1488_s0 + $0x28] sm:$0xff]  ;;  %973 = vmatprep.mubr.msk.f32.mxu0 %vm90_vm0, %v46_v9  ;;  %v68_v13 = vld [vmem:[%s1491_s2 + $0x10] sm:$0xff] }
   0x4   :  { %1048 = vmatprep.subr.msk.bf16.mxu0 %vm1260_vm1, %v1046_v5  ;;  %v66_v12 = vld [vmem:[%s1491_s2] sm:$0xff]  ;;  %82 = vperm.xlu1 %1137, %v68_v13   ;;  %v1058_v14 = vpack.c.bf16 %v55_v11, %v54_v10  ;;  %v67_v15 = vld [vmem:[%s1491_s2 + $0x8] sm:$0xff]  ;;  %v69_v16 = vld [vmem:[%s1491_s2 + $0x18] sm:$0xff] }
   0x5   :  { %1051 = vmatpush3.bf16.xpose.msk.msra.mxu0 %vm1260_vm1, %v1046_v5  ;;  %72 = vperm.xlu0 %1136, %v66_v12   ;;  %v244_v17 = vld [vmem:[%s1492_s4] sm:$0xff]  ;;  %v56_v18 = vld [vmem:[%s1488_s0 + $0x30] sm:$0xff]  ;;  %v57_v19 = vld [vmem:[%s1488_s0 + $0x38] sm:$0xff] }
   0x6   :  { %1054 = vmatprep.subr.msk.bf16.mxu0 %vm1260_vm1, %v1052_v8  ;;  %v245_v20 = vld [vmem:[%s1492_s4 + $0x8] sm:$0xff]  ;;  %v1064_v21 = vpack.c.bf16 %v57_v19, %v56_v18  ;;  %v246_v22 = vld [vmem:[%s1492_s4 + $0x10] sm:$0xff]  ;;  %v247_v23 = vld [vmem:[%s1492_s4 + $0x18] sm:$0xff] }
   0x7   :  { %v374_v24 = vld [vmem:[%s1493_s6] sm:$0xff]  ;;  %v59_v26 = vld [vmem:[%s1488_s0 + $0x48] sm:$0xff]  ;;  %v376_v29 = vld [vmem:[%s1493_s6 + $0x10] sm:$0xff] }
   0x8   :  { %87 = vperm.xlu1 %1137, %v69_v16   ;;  %v58_v25 = vld [vmem:[%s1488_s0 + $0x40] sm:$0xff]  ;;  %v375_v27 = vld [vmem:[%s1493_s6 + $0x8] sm:$0xff]  ;;  %v377_v30 = vld [vmem:[%s1493_s6 + $0x18] sm:$0xff] }
   0x9   :  { %77 = vperm.xlu0 %1136, %v67_v15   ;;  %v1070_v28 = vpack.c.bf16 %v59_v26, %v58_v25  ;;  %v503_v31 = vld [vmem:[%s1494_s8] sm:$0xff]  ;;  %v60_v32 = vld [vmem:[%s1488_s0 + $0x50] sm:$0xff]  ;;  %v61_v33 = vld [vmem:[%s1488_s0 + $0x58] sm:$0xff] }
   0xa   :  { %v504_v34 = vld [vmem:[%s1494_s8 + $0x8] sm:$0xff]  ;;  %v1076_v35 = vpack.c.bf16 %v61_v33, %v60_v32  ;;  %v505_v36 = vld [vmem:[%s1494_s8 + $0x10] sm:$0xff]  ;;  %v506_v37 = vld [vmem:[%s1494_s8 + $0x18] sm:$0xff] }
   0xb   :  { %v632_v38 = vld [vmem:[%s1495_s10] sm:$0xff]  ;;  %v63_v40 = vld [vmem:[%s1488_s0 + $0x68] sm:$0xff]  ;;  %v634_v43 = vld [vmem:[%s1495_s10 + $0x10] sm:$0xff] }
   0xc   :  { %255 = vperm.xlu1 %1137, %v245_v20   ;;  %v62_v39 = vld [vmem:[%s1488_s0 + $0x60] sm:$0xff]  ;;  %v633_v41 = vld [vmem:[%s1495_s10 + $0x8] sm:$0xff]  ;;  %v635_v44 = vld [vmem:[%s1495_s10 + $0x18] sm:$0xff] }
   0xd   :  { %1057 = vmatpush3.bf16.xpose.msk.msra.mxu0 %vm1260_vm1, %v1052_v8  ;;  %250 = vperm.xlu0 %1136, %v244_v17   ;;  %v1082_v42 = vpack.c.bf16 %v63_v40, %v62_v39  ;;  %v758_v45 = vld [vmem:[#allocation2] sm:$0x1]  ;;  %v64_v46 = vld [vmem:[%s1488_s0 + $0x70] sm:$0xff]  ;;  %v65_v47 = vld [vmem:[%s1488_s0 + $0x78] sm:$0xff] }
   0xe   :  { %1060 = vmatprep.subr.msk.bf16.mxu0 %vm1260_vm1, %v1058_v14  ;;  %v1088_v48 = vpack.c.bf16 %v65_v47, %v64_v46  ;;  %v47_v49 = vld [vmem:[%s1490_s1 + $0x8] sm:$0xff]  ;;  %v48_v50 = vld [vmem:[%s1490_s1 + $0x10] sm:$0xff]  ;;  %v49_v51 = vld [vmem:[%s1490_s1 + $0x18] sm:$0xff] }
   0xf   :  { %v240_v52 = vld [vmem:[%s1496_s3] sm:$0xff]  ;;  %v241_v7 = vld [vmem:[%s1496_s3 + $0x8] sm:$0xff]  ;;  %v242_v8 = vld [vmem:[%s1496_s3 + $0x10] sm:$0xff] }
  0x10   :  { %265 = vperm.xlu1 %1137, %v247_v23   ;;  %987 = vmatprep.mubr.msk.f32.mxu1 %vm268_vm2, %v240_v52  ;;  %v243_v9 = vld [vmem:[%s1496_s3 + $0x18] sm:$0xff]  ;;  %v370_v10 = vld [vmem:[%s1497_s5] sm:$0xff]  ;;  %v501_v52 = vld [vmem:[%s1498_s7 + $0x10] sm:$0xff] }
  0x11   :  { %260 = vperm.xlu0 %1136, %v246_v22   ;;  %v499_v32 = vld [vmem:[%s1498_s7] sm:$0xff] }
  0x14   :  { %385 = vperm.xlu1 %1137, %v375_v27  }
  0x15   :  { %1063 = vmatpush3.bf16.xpose.msk.msra.mxu0 %vm1260_vm1, %v1058_v14  ;;  %380 = vperm.xlu0 %1136, %v374_v24  }
  0x16   :  { %1066 = vmatprep.subr.msk.bf16.mxu0 %vm1260_vm1, %v1064_v21 }
  0x18   :  { %395 = vperm.xlu1 %1137, %v377_v30   ;;  %v372_v30 = vld [vmem:[%s1497_s5 + $0x10] sm:$0xff] }
  0x19   :  { %390 = vperm.xlu0 %1136, %v376_v29   ;;  %v371_v29 = vld [vmem:[%s1497_s5 + $0x8] sm:$0xff] }
  0x1c   :  { %514 = vperm.xlu1 %1137, %v504_v34  }
  0x1d   :  { %1069 = vmatpush3.bf16.xpose.msk.msra.mxu0 %vm1260_vm1, %v1064_v21  ;;  %509 = vperm.xlu0 %1136, %v503_v31   ;;  %v373_v31 = vld [vmem:[%s1497_s5 + $0x18] sm:$0xff] }
  0x1e   :  { %1072 = vmatprep.subr.msk.bf16.mxu0 %vm1260_vm1, %v1070_v28 }
  0x20   :  { %524 = vperm.xlu1 %1137, %v506_v37  }
  0x21   :  { %519 = vperm.xlu0 %1136, %v505_v36  }
  0x24   :  { %643 = vperm.xlu1 %1137, %v633_v41  }
  0x25   :  { %1075 = vmatpush3.bf16.xpose.msk.msra.mxu0 %vm1260_vm1, %v1070_v28  ;;  %638 = vperm.xlu0 %1136, %v632_v38  }
  0x26   :  { %1078 = vmatprep.subr.msk.bf16.mxu0 %vm1260_vm1, %v1076_v35 }
  0x28   :  { %653 = vperm.xlu1 %1137, %v635_v44  }
  0x29   :  { %648 = vperm.xlu0 %1136, %v634_v43  }
  0x2d   :  { %1081 = vmatpush3.bf16.xpose.msk.msra.mxu0 %vm1260_vm1, %v1076_v35  ;;  %761 = vperm.xlu0 %1136, %v758_v45  }
  0x2e   :  { %1084 = vmatprep.subr.msk.bf16.mxu0 %vm1260_vm1, %v1082_v42 }
  0x35   :  { %1087 = vmatpush3.bf16.xpose.msk.msra.mxu0 %vm1260_vm1, %v1082_v42 }
  0x36   :  { %1090 = vmatprep.subr.msk.bf16.mxu0 %vm1260_vm1, %v1088_v48 }
  0x3d   :  { %1093 = vmatpush3.bf16.xpose.msk.msra.mxu0 %vm1260_vm1, %v1088_v48 }
  0x44   :  { %974 = vmatmul.mubr.msk.f32.vlgmr.msra.gmra.mrb[0].mxu0 %vm90_vm0, %v47_v49 }
  0x45   :  { %976 = vmatprep.mubr.msk.f32.mxu0 %vm90_vm0, %v48_v50 }
  0x48   :  { %977 = vmatmul.mubr.msk.f32.gmra.mrb[2].mxu0 %vm90_vm0, %v49_v51  ;;  %v500_v51 = vld [vmem:[%s1498_s7 + $0x8] sm:$0xff] }
  0x83   :  { %v83_v54 = vpop.permute.xlu1 %82 }
  0x84   :  { %v73_v53 = vpop.permute.xlu0 %72 }
  0x87   :  { %v88_v60 = vpop.permute.xlu1 %87 }
  0x88   :  { %v78_v55 = vpop.permute.xlu0 %77 }
  0x8b   :  { %v256_v11 = vpop.permute.xlu1 %255 }
  0x8c   :  { %v251_v12 = vpop.permute.xlu0 %250 }
  0x8f   :  { %v266_v17 = vpop.permute.xlu1 %265 }
  0x90   :  { %v261_v19 = vpop.permute.xlu0 %260 }
  0x93   :  { %v386_v33 = vpop.permute.xlu1 %385 }
  0x94   :  { %v381_v34 = vpop.permute.xlu0 %380 }
  0x97   :  { %v396_v39 = vpop.permute.xlu1 %395 }
  0x98   :  { %v391_v41 = vpop.permute.xlu0 %390 }
 0x117   :  { %v975_v56 = vpop.f32.mrb[0].mxu0 }
 0x118   :  { %v223_v57 = vadd.f32 %v975_v56, %v78_v55  ;;  %v217_v58 = vpop.f32.mrb[1].mxu0  ;;  %v515_v55 = vpop.permute.xlu1 %514 }
 0x119   :  { %v218_v59 = vadd.f32 %v217_v58, %v73_v53  ;;  %v502_v53 = vld [vmem:[%s1498_s7 + $0x18] sm:$0xff]  ;;  %v510_v56 = vpop.permute.xlu0 %509 }
 0x11a   :  { %1138 = vtanh.f32 %v223_v57 }
 0x11b   :  { %1140 = vtanh.f32 %v218_v59  ;;  %v978_v61 = vpop.f32.mrb[2].mxu0 }
 0x11c   :  { %v233_v62 = vadd.f32 %v978_v61, %v88_v60  ;;  %v227_v63 = vpop.f32.mrb[3].mxu0  ;;  %v525_v61 = vpop.permute.xlu1 %524 }
 0x11d   :  { %v228_v0 = vadd.f32 %v227_v63, %v83_v54  ;;  %v628_v54 = vld [vmem:[%s1499_s9] sm:$0xff]  ;;  %v520_v63 = vpop.permute.xlu0 %519 }
 0x11e   :  { %1142 = vtanh.f32 %v233_v62 }
 0x11f   :  { %1144 = vtanh.f32 %v228_v0 }
 0x124   :  { %v1139_v1 = vpop.eup %1138 }
 0x125   :  { %v1141_v2 = vpop.eup %1140 }
 0x126   :  { %v1094_v3 = vpack.c.bf16 %v1139_v1, %v1141_v2 }
 0x128   :  { %v1143_v4 = vpop.eup %1142  ;;  %1095 = vmatprep.subr.bf16.mxu1 %v1094_v3 }
 0x129   :  { %v1145_v5 = vpop.eup %1144  ;;  %1097 = vmatpush3.bf16.msra.mxu1 %v1094_v3 }
 0x12a   :  { %v1098_v6 = vpack.c.bf16 %v1143_v4, %v1145_v5 }
 0x12c   :  { %1099 = vmatprep.subr.bf16.mxu1 %v1098_v6 }
 0x12d   :  { %1101 = vmatpush3.bf16.msra.mxu1 %v1098_v6 }
 0x130   :  { %988 = vmatmul.mubr.msk.f32.vlgmr.msra.gmra.mrb[0].mxu1 %vm268_vm2, %v241_v7 }
 0x131   :  { %990 = vmatprep.mubr.msk.f32.mxu1 %vm268_vm2, %v242_v8 }
 0x134   :  { %991 = vmatmul.mubr.msk.f32.gmra.mrb[2].mxu1 %vm268_vm2, %v243_v9  ;;  %v629_v9 = vld [vmem:[%s1499_s9 + $0x8] sm:$0xff] }
 0x135   :  { %1001 = vmatprep.mubr.msk.f32.mxu1 %vm268_vm2, %v370_v10  ;;  %v630_v10 = vld [vmem:[%s1499_s9 + $0x10] sm:$0xff] }
 0x203   :  { %v989_v13 = vpop.f32.mrb[0].mxu1 }
 0x204   :  { %v353_v14 = vadd.f32 %v989_v13, %v256_v11  ;;  %v347_v15 = vpop.f32.mrb[1].mxu1  ;;  %v631_v11 = vld [vmem:[%s1499_s9 + $0x18] sm:$0xff]  ;;  %v1181_v13 = vmov 0.0  }
 0x205   :  { %v348_v16 = vadd.f32 %v347_v15, %v251_v12  ;;  %v1179_v12 = vmov 0.0|0.0   ;;  %v639_v15 = vpop.permute.xlu0 %638 }
 0x206   :  { %1146 = vtanh.f32 %v353_v14  ;;  %v644_v14 = vpop.permute.xlu1 %643 }
 0x207   :  { %1148 = vtanh.f32 %v348_v16  ;;  %v992_v18 = vpop.f32.mrb[2].mxu1 }
 0x208   :  { %v363_v20 = vadd.f32 %v992_v18, %v266_v17  ;;  %v357_v21 = vpop.f32.mrb[3].mxu1 }
 0x209   :  { %v358_v22 = vadd.f32 %v357_v21, %v261_v19 }
 0x20a   :  { %1150 = vtanh.f32 %v363_v20  ;;  %v654_v20 = vpop.permute.xlu1 %653 }
 0x20b   :  { %1152 = vtanh.f32 %v358_v22  ;;  %v649_v22 = vpop.permute.xlu0 %648 }
 0x210   :  { %v1147_v23 = vpop.eup %1146 }
 0x211   :  { %v1149_v24 = vpop.eup %1148 }
 0x212   :  { %v1102_v25 = vpack.c.bf16 %v1147_v23, %v1149_v24 }
 0x214   :  { %v1151_v26 = vpop.eup %1150  ;;  %1103 = vmatprep.subr.bf16.mxu1 %v1102_v25 }
 0x215   :  { %v1153_v27 = vpop.eup %1152  ;;  %1105 = vmatpush3.bf16.msra.mxu1 %v1102_v25 }
 0x216   :  { %v1106_v28 = vpack.c.bf16 %v1151_v26, %v1153_v27 }
 0x218   :  { %1107 = vmatprep.subr.bf16.mxu1 %v1106_v28 }
 0x219   :  { %1109 = vmatpush3.bf16.msra.mxu1 %v1106_v28 }
 0x21c   :  { %1002 = vmatmul.mubr.msk.f32.vlgmr.msra.gmra.mrb[4].mxu1 %vm268_vm2, %v371_v29 }
 0x21d   :  { %1004 = vmatprep.mubr.msk.f32.mxu1 %vm268_vm2, %v372_v30 }
 0x220   :  { %1005 = vmatmul.mubr.msk.f32.gmra.mrb[6].mxu1 %vm268_vm2, %v373_v31 }
 0x221   :  { %1015 = vmatprep.mubr.msk.f32.mxu1 %vm268_vm2, %v499_v32  ;;  %v757_v32 = vld [vmem:[%s1500_s11] sm:$0x1] }
 0x2ef   :  { %v1003_v35 = vpop.f32.mrb[4].mxu1 }
 0x2f0   :  { %v482_v36 = vadd.f32 %v1003_v35, %v386_v33  ;;  %v476_v37 = vpop.f32.mrb[5].mxu1  ;;  %v764_v33 = vlaneseq }
 0x2f1   :  { %v477_v38 = vadd.f32 %v476_v37, %v381_v34 }
 0x2f2   :  { %1154 = vtanh.f32 %v482_v36  ;;  %v765_v34 = vshrl.u32 %v764_v33, 7  ;;  %v762_v36 = vpop.permute.xlu0 %761 }
 0x2f3   :  { %1156 = vtanh.f32 %v477_v38  ;;  %v1006_v40 = vpop.f32.mrb[6].mxu1 }
 0x2f4   :  { %v492_v42 = vadd.f32 %v1006_v40, %v396_v39  ;;  %v486_v43 = vpop.f32.mrb[7].mxu1  ;;  %v766_v35 = vsub.s32 0, %v765_v34 }
 0x2f5   :  { %v487_v44 = vadd.f32 %v486_v43, %v391_v41 }
 0x2f6   :  { %1158 = vtanh.f32 %v492_v42  ;;  %v767_v37 = vrot.slane %v762_v36, %v766_v35 }
 0x2f7   :  { %1160 = vtanh.f32 %v487_v44 }
 0x2fc   :  { %v1155_v45 = vpop.eup %1154 }
 0x2fd   :  { %v1157_v46 = vpop.eup %1156 }
 0x2fe   :  { %v1110_v47 = vpack.c.bf16 %v1155_v45, %v1157_v46 }
 0x300   :  { %v1159_v48 = vpop.eup %1158  ;;  %1111 = vmatprep.subr.bf16.mxu1 %v1110_v47 }
 0x301   :  { %v1161_v49 = vpop.eup %1160  ;;  %1113 = vmatpush3.bf16.msra.mxu1 %v1110_v47 }
 0x302   :  { %v1114_v50 = vpack.c.bf16 %v1159_v48, %v1161_v49 }
 0x304   :  { %1115 = vmatprep.subr.bf16.mxu1 %v1114_v50 }
 0x305   :  { %1117 = vmatpush3.bf16.msra.mxu1 %v1114_v50 }
 0x308   :  { %1016 = vmatmul.mubr.msk.f32.vlgmr.msra.gmra.mrb[8].mxu1 %vm268_vm2, %v500_v51 }
 0x309   :  { %1018 = vmatprep.mubr.msk.f32.mxu1 %vm268_vm2, %v501_v52 }
 0x30c   :  { %1019 = vmatmul.mubr.msk.f32.gmra.mrb[10].mxu1 %vm268_vm2, %v502_v53 }
 0x30d   :  { %1029 = vmatprep.mubr.msk.f32.mxu1 %vm268_vm2, %v628_v54 }
 0x3db   :  { %v1017_v57 = vpop.f32.mrb[8].mxu1 }
 0x3dc   :  { %v611_v58 = vadd.f32 %v1017_v57, %v515_v55  ;;  %v605_v59 = vpop.f32.mrb[9].mxu1 }
 0x3dd   :  { %v606_v60 = vadd.f32 %v605_v59, %v510_v56 }
 0x3de   :  { %1162 = vtanh.f32 %v611_v58 }
 0x3df   :  { %1164 = vtanh.f32 %v606_v60  ;;  %v1020_v62 = vpop.f32.mrb[10].mxu1 }
 0x3e0   :  { %v621_v0 = vadd.f32 %v1020_v62, %v525_v61  ;;  %v615_v1 = vpop.f32.mrb[11].mxu1 }
 0x3e1   :  { %v616_v2 = vadd.f32 %v615_v1, %v520_v63 }
 0x3e2   :  { %1166 = vtanh.f32 %v621_v0 }
 0x3e3   :  { %1168 = vtanh.f32 %v616_v2 }
 0x3e8   :  { %v1163_v3 = vpop.eup %1162 }
 0x3e9   :  { %v1165_v4 = vpop.eup %1164 }
 0x3ea   :  { %v1118_v5 = vpack.c.bf16 %v1163_v3, %v1165_v4 }
 0x3ec   :  { %v1167_v6 = vpop.eup %1166  ;;  %1119 = vmatprep.subr.bf16.mxu1 %v1118_v5 }
 0x3ed   :  { %v1169_v7 = vpop.eup %1168  ;;  %1121 = vmatpush3.bf16.msra.mxu1 %v1118_v5 }
 0x3ee   :  { %v1122_v8 = vpack.c.bf16 %v1167_v6, %v1169_v7 }
 0x3f0   :  { %1123 = vmatprep.subr.bf16.mxu1 %v1122_v8 }
 0x3f1   :  { %1125 = vmatpush3.bf16.msra.mxu1 %v1122_v8 }
 0x3f2   :  { %1126 = vmatprep.subr.bf16.mxu1 %v1179_v12 }
 0x3f4   :  { %1030 = vmatmul.mubr.msk.f32.vlgmr.msra.gmra.mrb[12].mxu1 %vm268_vm2, %v629_v9 }
 0x3f5   :  { %1032 = vmatprep.mubr.msk.f32.mxu1 %vm268_vm2, %v630_v10 }
 0x3f8   :  { %1033 = vmatmul.mubr.msk.f32.gmra.mrb[14].mxu1 %vm268_vm2, %v631_v11 }
 0x3f9   :  { %1043 = vmatprep.mubr.msk.f32.mxu1 %vm1180_vm3, %v1181_v13 }
 0x4c7   :  { %v1031_v16 = vpop.f32.mrb[12].mxu1 }
 0x4c8   :  { %v740_v17 = vadd.f32 %v1031_v16, %v644_v14  ;;  %v734_v18 = vpop.f32.mrb[13].mxu1 }
 0x4c9   :  { %v735_v19 = vadd.f32 %v734_v18, %v639_v15 }
 0x4ca   :  { %1170 = vtanh.f32 %v740_v17 }
 0x4cb   :  { %1172 = vtanh.f32 %v735_v19  ;;  %v1034_v21 = vpop.f32.mrb[14].mxu1 }
 0x4cc   :  { %v750_v23 = vadd.f32 %v1034_v21, %v654_v20  ;;  %v744_v24 = vpop.f32.mrb[15].mxu1 }
 0x4cd   :  { %v745_v25 = vadd.f32 %v744_v24, %v649_v22 }
 0x4ce   :  { %1174 = vtanh.f32 %v750_v23 }
 0x4cf   :  { %1176 = vtanh.f32 %v745_v25 }
 0x4d4   :  { %v1171_v26 = vpop.eup %1170 }
 0x4d5   :  { %v1173_v27 = vpop.eup %1172 }
 0x4d6   :  { %v1127_v28 = vpack.c.bf16 %v1171_v26, %v1173_v27 }
 0x4d8   :  { %v1175_v29 = vpop.eup %1174  ;;  %1128 = vmatpush3.bf16.msra.mxu1 %v1127_v28 }
 0x4d9   :  { %v1177_v30 = vpop.eup %1176  ;;  %1129 = vmatprep.subr.bf16.mxu1 %v1179_v12 }
 0x4da   :  { %v1130_v31 = vpack.c.bf16 %v1175_v29, %v1177_v30 }
 0x4dc   :  { %1131 = vmatpush3.bf16.msra.mxu1 %v1130_v31 }
 0x4df   :  { %1044 = vmatmul.mubr.msk.f32.vlgmr.msra.gmra.mrb[16].mxu1 %vm268_vm2, %v757_v32 }
 0x5b2   :  { %v837_v38 = vpop.f32.mrb[16].mxu1 }
 0x5b3   :  { %v838_v39 = vadd.f32 %v837_v38, %v767_v37  ;;  %v1045_v40 = vpop.f32.mrb[17].mxu1 }
 0x5b5   :  { %v841_v41 = vmax.f32 %v838_v39, 0.0 }
 0x5b7   :  { %842 = vst [vmem:[%s1501_s13] sm:$0x1] %v841_v41 }

</bundles_post_ra>
